<compile_context>
chip_gen: v7x
topology: tpu7x:2x2x1
jax: 0.10.0
libtpu: 0.0.40
codegen_flags: <defaults>
</compile_context>

<pallas_src>
import functools

import jax
import jax.numpy as jnp
from jax.experimental import pallas as pl
from jax.experimental.pallas import tpu as pltpu

LN_EPS = 1e-5


def _layer_norm(x, g, b):
    mu = jnp.mean(x, axis=-1, keepdims=True)
    xc = x - mu
    var = jnp.mean(xc * xc, axis=-1, keepdims=True)
    return xc * jax.lax.rsqrt(var + LN_EPS) * g + b


def encoder_layer_kernel(
    num_heads,
    # inputs
    x_ref, wqkv_ref, bqkv_ref, wo_ref, bo_ref,
    ln1_g_ref, ln1_b_ref, w1_ref, b1_ref, w2_ref, b2_ref,
    ln2_g_ref, ln2_b_ref,
    # outputs
    y_ref, lr_ref,
):
    T, C = x_ref.shape
    H = num_heads
    D = C // H

    x = x_ref[...].astype(jnp.float32)                       # (T, C) residual stream
    xb = x.astype(jnp.bfloat16)

    # ---- fused lane-dense QKV projection (scaling pre-folded into wq/bq) ----
    qkv = jnp.dot(xb, wqkv_ref[...], preferred_element_type=jnp.float32)
    qkv = qkv + bqkv_ref[...]                                 # (T, 3C) f32
    q = qkv[:, :C].astype(jnp.bfloat16)
    k = qkv[:, C:2 * C].astype(jnp.bfloat16)
    v = qkv[:, 2 * C:].astype(jnp.bfloat16)

    # ---- attention core: per-head lane slices (K=D-deep matmuls are
    #      inherently narrow on the MXU; the big-FLOP matmuls stay full-width) ----
    ctx_heads = []
    for h in range(H):
        sl = slice(h * D, (h + 1) * D)
        q_h, k_h, v_h = q[:, sl], k[:, sl], v[:, sl]
        s = jnp.dot(q_h, k_h.T, preferred_element_type=jnp.float32)      # (T, T)
        s = s - jnp.max(s, axis=-1, keepdims=True)
        p = jnp.exp(s)
        denom = jnp.sum(p, axis=-1, keepdims=True)                       # (T, 1)
        ctx_h = jnp.dot(p.astype(jnp.bfloat16), v_h,
                        preferred_element_type=jnp.float32)              # (T, D)
        # fold the softmax normalization into ctx (T*D, not T*T, multiplies)
        ctx_h = ctx_h * pl.reciprocal(denom, approx=True)
        ctx_heads.append(ctx_h.astype(jnp.bfloat16))

    # heads folded back into the lane dim -> single lane-dense (C,C) projection
    ctx = jnp.concatenate(ctx_heads, axis=-1)                            # (T, C)
    attn_out = jnp.dot(ctx, wo_ref[...],
                       preferred_element_type=jnp.float32) + bo_ref[...]

    # residual + self_attn_layer_norm   (layer_norm_first = False)
    x = x + attn_out
    x = _layer_norm(x, ln1_g_ref[...], ln1_b_ref[...])

    # ---- feed-forward (relu activation) ----
    residual = x
    h1 = jnp.dot(x.astype(jnp.bfloat16), w1_ref[...],
                 preferred_element_type=jnp.float32) + b1_ref[...]
    h1 = jnp.maximum(h1, 0.0)
    h2 = jnp.dot(h1.astype(jnp.bfloat16), w2_ref[...],
                 preferred_element_type=jnp.float32) + b2_ref[...]
    lr_ref[...] = h2.astype(lr_ref.dtype)                    # layer_result

    x = residual + h2
    x = _layer_norm(x, ln2_g_ref[...], ln2_b_ref[...])
    y_ref[...] = x.astype(y_ref.dtype)


def prepare_params(params, num_heads):
    """One-time weight re-layout (hoisted out of the per-call forward path)."""
    C = params["wq"].shape[0]
    D = C // num_heads
    scaling = 1.0 / float(D) ** 0.5
    bf16, f32 = jnp.bfloat16, jnp.float32
    # fairseq MHA: (x@wq + bq) * scaling  ==  x@(wq*scaling) + bq*scaling
    wqkv = jnp.concatenate(
        [params["wq"] * scaling, params["wk"], params["wv"]], axis=1).astype(bf16)
    bqkv = jnp.concatenate(
        [params["bq"].reshape(1, C) * scaling,
         params["bk"].reshape(1, C),
         params["bv"].reshape(1, C)], axis=1).astype(f32)
    return {
        "wqkv": wqkv, "bqkv": bqkv,
        "wo": params["wo"].astype(bf16),
        "bo": params["bo"].reshape(1, C).astype(f32),
        "ln1_g": params["ln1_g"].reshape(1, C).astype(f32),
        "ln1_b": params["ln1_b"].reshape(1, C).astype(f32),
        "w1": params["w1"].astype(bf16),
        "b1": params["b1"].reshape(1, -1).astype(f32),
        "w2": params["w2"].astype(bf16),
        "b2": params["b2"].reshape(1, -1).astype(f32),
        "ln2_g": params["ln2_g"].reshape(1, C).astype(f32),
        "ln2_b": params["ln2_b"].reshape(1, C).astype(f32),
    }


@functools.partial(jax.jit, static_argnames=("num_heads",))
def transformer_encoder_layer(x_tbc, prep, num_heads):
    """x_tbc: (T, B, C) float32 (seq-first, like the PyTorch module).
       Returns (x, (attn, layer_result), attn) like the module (attn=None)."""
    T, B, C = x_tbc.shape

    # single batch-major transpose: per-batch attention, no packed-token mask
    x_btc = jnp.transpose(x_tbc, (1, 0, 2))                  # (B, T, C)

    ordered = [prep[n] for n in
               ("wqkv", "bqkv", "wo", "bo", "ln1_g", "ln1_b",
                "w1", "b1", "w2", "b2", "ln2_g", "ln2_b")]

    def const_spec(a):
        # constant index_map -> weights stay VMEM-resident across grid steps
        z = (0,) * a.ndim
        return pl.BlockSpec(a.shape, lambda b, z=z: z)

    batch_spec = pl.BlockSpec((None, T, C), lambda b: (b, 0, 0))

    kernel = functools.partial(encoder_layer_kernel, num_heads)
    y_btc, lr_btc = pl.pallas_call(
        kernel,
        out_shape=(jax.ShapeDtypeStruct((B, T, C), x_tbc.dtype),
                   jax.ShapeDtypeStruct((B, T, C), x_tbc.dtype)),
        grid=(B,),
        in_specs=[batch_spec] + [const_spec(a) for a in ordered],
        out_specs=(batch_spec, batch_spec),
        compiler_params=pltpu.CompilerParams(
            dimension_semantics=("parallel",)),
    )(x_btc, *ordered)

    attn = None  # need_weights=False in the reference forward
    y = jnp.transpose(y_btc, (1, 0, 2))
    lr = jnp.transpose(lr_btc, (1, 0, 2))
    return y, (attn, lr), attn


# ------------------- pure-JAX f32 reference (for checking) -------------------
def reference_forward(x_tbc, params, num_heads):
    T, B, C = x_tbc.shape
    D = C // num_heads
    scaling = 1.0 / float(D) ** 0.5
    x = jnp.transpose(x_tbc, (1, 0, 2))              # (B, T, C)

    def ln(v, g, b):
        mu = jnp.mean(v, -1, keepdims=True)
        var = jnp.mean((v - mu) ** 2, -1, keepdims=True)
        return (v - mu) * jax.lax.rsqrt(var + LN_EPS) * g + b

    q = (x @ params["wq"] + params["bq"]) * scaling
    k = x @ params["wk"] + params["bk"]
    v = x @ params["wv"] + params["bv"]
    q = q.reshape(B, T, num_heads, D).transpose(0, 2, 1, 3)
    k = k.reshape(B, T, num_heads, D).transpose(0, 2, 1, 3)
    v = v.reshape(B, T, num_heads, D).transpose(0, 2, 1, 3)
    s = q @ jnp.swapaxes(k, -1, -2)
    p = jax.nn.softmax(s, axis=-1)
    o = (p @ v).transpose(0, 2, 1, 3).reshape(B, T, C)
    o = o @ params["wo"] + params["bo"]

    x = ln(x + o, params["ln1_g"], params["ln1_b"])
    res = x
    h = jnp.maximum(x @ params["w1"] + params["b1"], 0.0)
    h = h @ params["w2"] + params["b2"]
    x = ln(res + h, params["ln2_g"], params["ln2_b"])
    return jnp.transpose(x, (1, 0, 2)), jnp.transpose(h, (1, 0, 2))


# ------------------------------------ main ------------------------------------
if __name__ == "__main__":
    T, B, C, H, FFN = 8, 2, 32, 4, 64   # small shapes consistent with the module

    key = jax.random.PRNGKey(0)
    keys = jax.random.split(key, 16)
    s = 0.05

    params = {
        # attention projections: stored as (in, out) = W.T of a torch nn.Linear
        "wq": jax.random.normal(keys[0], (C, C), jnp.float32) * s,
        "bq": jax.random.normal(keys[1], (1, C), jnp.float32) * s,
        "wk": jax.random.normal(keys[2], (C, C), jnp.float32) * s,
        "bk": jax.random.normal(keys[3], (1, C), jnp.float32) * s,
        "wv": jax.random.normal(keys[4], (C, C), jnp.float32) * s,
        "bv": jax.random.normal(keys[5], (1, C), jnp.float32) * s,
        "wo": jax.random.normal(keys[6], (C, C), jnp.float32) * s,
        "bo": jax.random.normal(keys[7], (1, C), jnp.float32) * s,
        # self_attn_layer_norm
        "ln1_g": jnp.ones((1, C), jnp.float32),
        "ln1_b": jnp.zeros((1, C), jnp.float32),
        # fc1 / fc2
        "w1": jax.random.normal(keys[8], (C, FFN), jnp.float32) * s,
        "b1": jax.random.normal(keys[9], (1, FFN), jnp.float32) * s,
        "w2": jax.random.normal(keys[10], (FFN, C), jnp.float32) * s,
        "b2": jax.random.normal(keys[11], (1, C), jnp.float32) * s,
        # final_layer_norm
        "ln2_g": jnp.ones((1, C), jnp.float32),
        "ln2_b": jnp.zeros((1, C), jnp.float32),
    }

    x = jax.random.normal(keys[12], (T, B, C), jnp.float32)

    prep = prepare_params(params, H)              # hoisted one-time weight prep
    y, (attn, layer_result), attn2 = transformer_encoder_layer(x, prep, num_heads=H)
    y = jax.block_until_ready(y)
    layer_result = jax.block_until_ready(layer_result)

    y_ref, lr_ref = reference_forward(x, params, H)
    # bf16 MXU operands + approx reciprocal => loosened tolerance vs f32 reference
    assert jnp.allclose(y, y_ref, atol=3e-2, rtol=3e-2), "output mismatch"
    assert jnp.allclose(layer_result, lr_ref, atol=3e-2, rtol=3e-2), "layer_result mismatch"

    print("KERNEL_OK")
</pallas_src>

<mosaic_0001>
module attributes {stable_mosaic.version = 11 : i64} {
  func.func @encoder_layer_kernel(%arg0: i32, %arg1: memref<1x8x32xf32, #tpu.memory_space<vmem>>, %arg2: memref<32x96xbf16, #tpu.memory_space<vmem>>, %arg3: memref<1x96xf32, #tpu.memory_space<vmem>>, %arg4: memref<32x32xbf16, #tpu.memory_space<vmem>>, %arg5: memref<1x32xf32, #tpu.memory_space<vmem>>, %arg6: memref<1x32xf32, #tpu.memory_space<vmem>>, %arg7: memref<1x32xf32, #tpu.memory_space<vmem>>, %arg8: memref<32x64xbf16, #tpu.memory_space<vmem>>, %arg9: memref<1x64xf32, #tpu.memory_space<vmem>>, %arg10: memref<64x32xbf16, #tpu.memory_space<vmem>>, %arg11: memref<1x32xf32, #tpu.memory_space<vmem>>, %arg12: memref<1x32xf32, #tpu.memory_space<vmem>>, %arg13: memref<1x32xf32, #tpu.memory_space<vmem>>, %arg14: memref<1x8x32xf32, #tpu.memory_space<vmem>>, %arg15: memref<1x8x32xf32, #tpu.memory_space<vmem>>) attributes {dimension_semantics = [#tpu.dimension_semantics<parallel>], iteration_bounds = array<i64: 2>, scalar_prefetch = 0 : i64, scratch_operands = 0 : i64, tpu.core_type = #tpu.core_type<tc>, window_params = [{transform_indices = @transform_0, window_bounds = array<i64: 1, 8, 32>}, {pipeline_mode = #tpu.pipeline_mode<synchronous>, transform_indices = @transform_1, window_bounds = array<i64: 32, 96>}, {pipeline_mode = #tpu.pipeline_mode<synchronous>, transform_indices = @transform_2, window_bounds = array<i64: 1, 96>}, {pipeline_mode = #tpu.pipeline_mode<synchronous>, transform_indices = @transform_3, window_bounds = array<i64: 32, 32>}, {pipeline_mode = #tpu.pipeline_mode<synchronous>, transform_indices = @transform_4, window_bounds = array<i64: 1, 32>}, {pipeline_mode = #tpu.pipeline_mode<synchronous>, transform_indices = @transform_5, window_bounds = array<i64: 1, 32>}, {pipeline_mode = #tpu.pipeline_mode<synchronous>, transform_indices = @transform_6, window_bounds = array<i64: 1, 32>}, {pipeline_mode = #tpu.pipeline_mode<synchronous>, transform_indices = @transform_7, window_bounds = array<i64: 32, 64>}, {pipeline_mode = #tpu.pipeline_mode<synchronous>, transform_indices = @transform_8, window_bounds = array<i64: 1, 64>}, {pipeline_mode = #tpu.pipeline_mode<synchronous>, transform_indices = @transform_9, window_bounds = array<i64: 64, 32>}, {pipeline_mode = #tpu.pipeline_mode<synchronous>, transform_indices = @transform_10, window_bounds = array<i64: 1, 32>}, {pipeline_mode = #tpu.pipeline_mode<synchronous>, transform_indices = @transform_11, window_bounds = array<i64: 1, 32>}, {pipeline_mode = #tpu.pipeline_mode<synchronous>, transform_indices = @transform_12, window_bounds = array<i64: 1, 32>}, {transform_indices = @transform_13, window_bounds = array<i64: 1, 8, 32>}, {transform_indices = @transform_14, window_bounds = array<i64: 1, 8, 32>}]} {
    %c0 = arith.constant 0 : index
    %c0_0 = arith.constant 0 : index
    %c0_1 = arith.constant 0 : index
    %0 = vector.load %arg1[%c0, %c0_0, %c0_1] : memref<1x8x32xf32, #tpu.memory_space<vmem>>, vector<1x8x32xf32>
    %1 = vector.shape_cast %0 : vector<1x8x32xf32> to vector<8x32xf32>
    %2 = arith.truncf %1 : vector<8x32xf32> to vector<8x32xbf16>
    %c0_2 = arith.constant 0 : index
    %c0_3 = arith.constant 0 : index
    %3 = vector.load %arg2[%c0_2, %c0_3] : memref<32x96xbf16, #tpu.memory_space<vmem>>, vector<32x96xbf16>
    %cst = arith.constant dense<0.000000e+00> : vector<8x96xf32>
    %4 = tpu.matmul %2, %3, %cst {dimension_numbers = #tpu.dot_dimension_numbers<[1], [0], [0], [1], [0, 0, 1, 1], [], []>} : vector<8x32xbf16>, vector<32x96xbf16>, vector<8x96xf32> -> vector<8x96xf32>
    %c0_4 = arith.constant 0 : index
    %c0_5 = arith.constant 0 : index
    %5 = vector.load %arg3[%c0_4, %c0_5] : memref<1x96xf32, #tpu.memory_space<vmem>>, vector<1x96xf32>
    %6 = vector.broadcast %5 : vector<1x96xf32> to vector<8x96xf32>
    %7 = arith.addf %4, %6 : vector<8x96xf32>
    %8 = vector.extract_strided_slice %7 {offsets = [0, 0], sizes = [8, 32], strides = [1, 1]} : vector<8x96xf32> to vector<8x32xf32>
    %9 = arith.truncf %8 : vector<8x32xf32> to vector<8x32xbf16>
    %10 = vector.extract_strided_slice %7 {offsets = [0, 32], sizes = [8, 32], strides = [1, 1]} : vector<8x96xf32> to vector<8x32xf32>
    %11 = arith.truncf %10 : vector<8x32xf32> to vector<8x32xbf16>
    %12 = vector.extract_strided_slice %7 {offsets = [0, 64], sizes = [8, 32], strides = [1, 1]} : vector<8x96xf32> to vector<8x32xf32>
    %13 = arith.truncf %12 : vector<8x32xf32> to vector<8x32xbf16>
    %14 = vector.extract_strided_slice %9 {offsets = [0, 0], sizes = [8, 8], strides = [1, 1]} : vector<8x32xbf16> to vector<8x8xbf16>
    %15 = vector.extract_strided_slice %11 {offsets = [0, 0], sizes = [8, 8], strides = [1, 1]} : vector<8x32xbf16> to vector<8x8xbf16>
    %16 = vector.extract_strided_slice %13 {offsets = [0, 0], sizes = [8, 8], strides = [1, 1]} : vector<8x32xbf16> to vector<8x8xbf16>
    %17 = tpu.transpose %15, [1, 0] : vector<8x8xbf16> -> vector<8x8xbf16>
    %cst_6 = arith.constant dense<0.000000e+00> : vector<8x8xf32>
    %18 = tpu.matmul %14, %17, %cst_6 {dimension_numbers = #tpu.dot_dimension_numbers<[1], [0], [0], [1], [0, 0, 1, 1], [], []>} : vector<8x8xbf16>, vector<8x8xbf16>, vector<8x8xf32> -> vector<8x8xf32>
    %cst_7 = arith.constant dense<0xFF800000> : vector<8xf32>
    %19 = vector.multi_reduction <maximumf>, %18, %cst_7 [1] : vector<8x8xf32> to vector<8xf32>
    %20 = vector.shape_cast %19 : vector<8xf32> to vector<8x1xf32>
    %21 = vector.broadcast %20 : vector<8x1xf32> to vector<8x8xf32>
    %22 = arith.subf %18, %21 : vector<8x8xf32>
    %23 = math.exp %22 : vector<8x8xf32>
    %cst_8 = arith.constant dense<0.000000e+00> : vector<8xf32>
    %24 = vector.multi_reduction <add>, %23, %cst_8 [1] : vector<8x8xf32> to vector<8xf32>
    %25 = vector.shape_cast %24 : vector<8xf32> to vector<8x1xf32>
    %26 = arith.truncf %23 : vector<8x8xf32> to vector<8x8xbf16>
    %cst_9 = arith.constant dense<0.000000e+00> : vector<8x8xf32>
    %27 = tpu.matmul %26, %16, %cst_9 {dimension_numbers = #tpu.dot_dimension_numbers<[1], [0], [0], [1], [0, 0, 1, 1], [], []>} : vector<8x8xbf16>, vector<8x8xbf16>, vector<8x8xf32> -> vector<8x8xf32>
    %28 = tpu.reciprocal %25 {approx = true} : vector<8x1xf32> -> vector<8x1xf32>
    %29 = vector.broadcast %28 : vector<8x1xf32> to vector<8x8xf32>
    %30 = arith.mulf %27, %29 : vector<8x8xf32>
    %31 = arith.truncf %30 : vector<8x8xf32> to vector<8x8xbf16>
    %32 = vector.extract_strided_slice %9 {offsets = [0, 8], sizes = [8, 8], strides = [1, 1]} : vector<8x32xbf16> to vector<8x8xbf16>
    %33 = vector.extract_strided_slice %11 {offsets = [0, 8], sizes = [8, 8], strides = [1, 1]} : vector<8x32xbf16> to vector<8x8xbf16>
    %34 = vector.extract_strided_slice %13 {offsets = [0, 8], sizes = [8, 8], strides = [1, 1]} : vector<8x32xbf16> to vector<8x8xbf16>
    %35 = tpu.transpose %33, [1, 0] : vector<8x8xbf16> -> vector<8x8xbf16>
    %cst_10 = arith.constant dense<0.000000e+00> : vector<8x8xf32>
    %36 = tpu.matmul %32, %35, %cst_10 {dimension_numbers = #tpu.dot_dimension_numbers<[1], [0], [0], [1], [0, 0, 1, 1], [], []>} : vector<8x8xbf16>, vector<8x8xbf16>, vector<8x8xf32> -> vector<8x8xf32>
    %cst_11 = arith.constant dense<0xFF800000> : vector<8xf32>
    %37 = vector.multi_reduction <maximumf>, %36, %cst_11 [1] : vector<8x8xf32> to vector<8xf32>
    %38 = vector.shape_cast %37 : vector<8xf32> to vector<8x1xf32>
    %39 = vector.broadcast %38 : vector<8x1xf32> to vector<8x8xf32>
    %40 = arith.subf %36, %39 : vector<8x8xf32>
    %41 = math.exp %40 : vector<8x8xf32>
    %cst_12 = arith.constant dense<0.000000e+00> : vector<8xf32>
    %42 = vector.multi_reduction <add>, %41, %cst_12 [1] : vector<8x8xf32> to vector<8xf32>
    %43 = vector.shape_cast %42 : vector<8xf32> to vector<8x1xf32>
    %44 = arith.truncf %41 : vector<8x8xf32> to vector<8x8xbf16>
    %cst_13 = arith.constant dense<0.000000e+00> : vector<8x8xf32>
    %45 = tpu.matmul %44, %34, %cst_13 {dimension_numbers = #tpu.dot_dimension_numbers<[1], [0], [0], [1], [0, 0, 1, 1], [], []>} : vector<8x8xbf16>, vector<8x8xbf16>, vector<8x8xf32> -> vector<8x8xf32>
    %46 = tpu.reciprocal %43 {approx = true} : vector<8x1xf32> -> vector<8x1xf32>
    %47 = vector.broadcast %46 : vector<8x1xf32> to vector<8x8xf32>
    %48 = arith.mulf %45, %47 : vector<8x8xf32>
    %49 = arith.truncf %48 : vector<8x8xf32> to vector<8x8xbf16>
    %50 = vector.extract_strided_slice %9 {offsets = [0, 16], sizes = [8, 8], strides = [1, 1]} : vector<8x32xbf16> to vector<8x8xbf16>
    %51 = vector.extract_strided_slice %11 {offsets = [0, 16], sizes = [8, 8], strides = [1, 1]} : vector<8x32xbf16> to vector<8x8xbf16>
    %52 = vector.extract_strided_slice %13 {offsets = [0, 16], sizes = [8, 8], strides = [1, 1]} : vector<8x32xbf16> to vector<8x8xbf16>
    %53 = tpu.transpose %51, [1, 0] : vector<8x8xbf16> -> vector<8x8xbf16>
    %cst_14 = arith.constant dense<0.000000e+00> : vector<8x8xf32>
    %54 = tpu.matmul %50, %53, %cst_14 {dimension_numbers = #tpu.dot_dimension_numbers<[1], [0], [0], [1], [0, 0, 1, 1], [], []>} : vector<8x8xbf16>, vector<8x8xbf16>, vector<8x8xf32> -> vector<8x8xf32>
    %cst_15 = arith.constant dense<0xFF800000> : vector<8xf32>
    %55 = vector.multi_reduction <maximumf>, %54, %cst_15 [1] : vector<8x8xf32> to vector<8xf32>
    %56 = vector.shape_cast %55 : vector<8xf32> to vector<8x1xf32>
    %57 = vector.broadcast %56 : vector<8x1xf32> to vector<8x8xf32>
    %58 = arith.subf %54, %57 : vector<8x8xf32>
    %59 = math.exp %58 : vector<8x8xf32>
    %cst_16 = arith.constant dense<0.000000e+00> : vector<8xf32>
    %60 = vector.multi_reduction <add>, %59, %cst_16 [1] : vector<8x8xf32> to vector<8xf32>
    %61 = vector.shape_cast %60 : vector<8xf32> to vector<8x1xf32>
    %62 = arith.truncf %59 : vector<8x8xf32> to vector<8x8xbf16>
    %cst_17 = arith.constant dense<0.000000e+00> : vector<8x8xf32>
    %63 = tpu.matmul %62, %52, %cst_17 {dimension_numbers = #tpu.dot_dimension_numbers<[1], [0], [0], [1], [0, 0, 1, 1], [], []>} : vector<8x8xbf16>, vector<8x8xbf16>, vector<8x8xf32> -> vector<8x8xf32>
    %64 = tpu.reciprocal %61 {approx = true} : vector<8x1xf32> -> vector<8x1xf32>
    %65 = vector.broadcast %64 : vector<8x1xf32> to vector<8x8xf32>
    %66 = arith.mulf %63, %65 : vector<8x8xf32>
    %67 = arith.truncf %66 : vector<8x8xf32> to vector<8x8xbf16>
    %68 = vector.extract_strided_slice %9 {offsets = [0, 24], sizes = [8, 8], strides = [1, 1]} : vector<8x32xbf16> to vector<8x8xbf16>
    %69 = vector.extract_strided_slice %11 {offsets = [0, 24], sizes = [8, 8], strides = [1, 1]} : vector<8x32xbf16> to vector<8x8xbf16>
    %70 = vector.extract_strided_slice %13 {offsets = [0, 24], sizes = [8, 8], strides = [1, 1]} : vector<8x32xbf16> to vector<8x8xbf16>
    %71 = tpu.transpose %69, [1, 0] : vector<8x8xbf16> -> vector<8x8xbf16>
    %cst_18 = arith.constant dense<0.000000e+00> : vector<8x8xf32>
    %72 = tpu.matmul %68, %71, %cst_18 {dimension_numbers = #tpu.dot_dimension_numbers<[1], [0], [0], [1], [0, 0, 1, 1], [], []>} : vector<8x8xbf16>, vector<8x8xbf16>, vector<8x8xf32> -> vector<8x8xf32>
    %cst_19 = arith.constant dense<0xFF800000> : vector<8xf32>
    %73 = vector.multi_reduction <maximumf>, %72, %cst_19 [1] : vector<8x8xf32> to vector<8xf32>
    %74 = vector.shape_cast %73 : vector<8xf32> to vector<8x1xf32>
    %75 = vector.broadcast %74 : vector<8x1xf32> to vector<8x8xf32>
    %76 = arith.subf %72, %75 : vector<8x8xf32>
    %77 = math.exp %76 : vector<8x8xf32>
    %cst_20 = arith.constant dense<0.000000e+00> : vector<8xf32>
    %78 = vector.multi_reduction <add>, %77, %cst_20 [1] : vector<8x8xf32> to vector<8xf32>
    %79 = vector.shape_cast %78 : vector<8xf32> to vector<8x1xf32>
    %80 = arith.truncf %77 : vector<8x8xf32> to vector<8x8xbf16>
    %cst_21 = arith.constant dense<0.000000e+00> : vector<8x8xf32>
    %81 = tpu.matmul %80, %70, %cst_21 {dimension_numbers = #tpu.dot_dimension_numbers<[1], [0], [0], [1], [0, 0, 1, 1], [], []>} : vector<8x8xbf16>, vector<8x8xbf16>, vector<8x8xf32> -> vector<8x8xf32>
    %82 = tpu.reciprocal %79 {approx = true} : vector<8x1xf32> -> vector<8x1xf32>
    %83 = vector.broadcast %82 : vector<8x1xf32> to vector<8x8xf32>
    %84 = arith.mulf %81, %83 : vector<8x8xf32>
    %85 = arith.truncf %84 : vector<8x8xf32> to vector<8x8xbf16>
    %86 = tpu.concatenate %31, %49, %67, %85 in 1 : vector<8x8xbf16>, vector<8x8xbf16>, vector<8x8xbf16>, vector<8x8xbf16> -> vector<8x32xbf16>
    %c0_22 = arith.constant 0 : index
    %c0_23 = arith.constant 0 : index
    %87 = vector.load %arg4[%c0_22, %c0_23] : memref<32x32xbf16, #tpu.memory_space<vmem>>, vector<32x32xbf16>
    %cst_24 = arith.constant dense<0.000000e+00> : vector<8x32xf32>
    %88 = tpu.matmul %86, %87, %cst_24 {dimension_numbers = #tpu.dot_dimension_numbers<[1], [0], [0], [1], [0, 0, 1, 1], [], []>} : vector<8x32xbf16>, vector<32x32xbf16>, vector<8x32xf32> -> vector<8x32xf32>
    %c0_25 = arith.constant 0 : index
    %c0_26 = arith.constant 0 : index
    %89 = vector.load %arg5[%c0_25, %c0_26] : memref<1x32xf32, #tpu.memory_space<vmem>>, vector<1x32xf32>
    %90 = vector.broadcast %89 : vector<1x32xf32> to vector<8x32xf32>
    %91 = arith.addf %88, %90 : vector<8x32xf32>
    %92 = arith.addf %1, %91 : vector<8x32xf32>
    %c0_27 = arith.constant 0 : index
    %c0_28 = arith.constant 0 : index
    %93 = vector.load %arg6[%c0_27, %c0_28] : memref<1x32xf32, #tpu.memory_space<vmem>>, vector<1x32xf32>
    %c0_29 = arith.constant 0 : index
    %c0_30 = arith.constant 0 : index
    %94 = vector.load %arg7[%c0_29, %c0_30] : memref<1x32xf32, #tpu.memory_space<vmem>>, vector<1x32xf32>
    %cst_31 = arith.constant dense<0.000000e+00> : vector<8xf32>
    %95 = vector.multi_reduction <add>, %92, %cst_31 [1] : vector<8x32xf32> to vector<8xf32>
    %96 = vector.shape_cast %95 : vector<8xf32> to vector<8x1xf32>
    %cst_32 = arith.constant 3.200000e+01 : f32
    %97 = vector.broadcast %cst_32 : f32 to vector<8x1xf32>
    %98 = arith.divf %96, %97 : vector<8x1xf32>
    %99 = vector.broadcast %98 : vector<8x1xf32> to vector<8x32xf32>
    %100 = arith.subf %92, %99 : vector<8x32xf32>
    %101 = arith.mulf %100, %100 : vector<8x32xf32>
    %cst_33 = arith.constant dense<0.000000e+00> : vector<8xf32>
    %102 = vector.multi_reduction <add>, %101, %cst_33 [1] : vector<8x32xf32> to vector<8xf32>
    %103 = vector.shape_cast %102 : vector<8xf32> to vector<8x1xf32>
    %cst_34 = arith.constant 3.200000e+01 : f32
    %104 = vector.broadcast %cst_34 : f32 to vector<8x1xf32>
    %105 = arith.divf %103, %104 : vector<8x1xf32>
    %cst_35 = arith.constant 9.99999974E-6 : f32
    %106 = vector.broadcast %cst_35 : f32 to vector<8x1xf32>
    %107 = arith.addf %105, %106 : vector<8x1xf32>
    %108 = math.rsqrt %107 : vector<8x1xf32>
    %109 = vector.broadcast %108 : vector<8x1xf32> to vector<8x32xf32>
    %110 = arith.mulf %100, %109 : vector<8x32xf32>
    %111 = vector.broadcast %93 : vector<1x32xf32> to vector<8x32xf32>
    %112 = arith.mulf %110, %111 : vector<8x32xf32>
    %113 = vector.broadcast %94 : vector<1x32xf32> to vector<8x32xf32>
    %114 = arith.addf %112, %113 : vector<8x32xf32>
    %115 = arith.truncf %114 : vector<8x32xf32> to vector<8x32xbf16>
    %c0_36 = arith.constant 0 : index
    %c0_37 = arith.constant 0 : index
    %116 = vector.load %arg8[%c0_36, %c0_37] : memref<32x64xbf16, #tpu.memory_space<vmem>>, vector<32x64xbf16>
    %cst_38 = arith.constant dense<0.000000e+00> : vector<8x64xf32>
    %117 = tpu.matmul %115, %116, %cst_38 {dimension_numbers = #tpu.dot_dimension_numbers<[1], [0], [0], [1], [0, 0, 1, 1], [], []>} : vector<8x32xbf16>, vector<32x64xbf16>, vector<8x64xf32> -> vector<8x64xf32>
    %c0_39 = arith.constant 0 : index
    %c0_40 = arith.constant 0 : index
    %118 = vector.load %arg9[%c0_39, %c0_40] : memref<1x64xf32, #tpu.memory_space<vmem>>, vector<1x64xf32>
    %119 = vector.broadcast %118 : vector<1x64xf32> to vector<8x64xf32>
    %120 = arith.addf %117, %119 : vector<8x64xf32>
    %cst_41 = arith.constant 0.000000e+00 : f32
    %121 = vector.broadcast %cst_41 : f32 to vector<8x64xf32>
    %122 = arith.maximumf %120, %121 : vector<8x64xf32>
    %123 = arith.truncf %122 : vector<8x64xf32> to vector<8x64xbf16>
    %c0_42 = arith.constant 0 : index
    %c0_43 = arith.constant 0 : index
    %124 = vector.load %arg10[%c0_42, %c0_43] : memref<64x32xbf16, #tpu.memory_space<vmem>>, vector<64x32xbf16>
    %cst_44 = arith.constant dense<0.000000e+00> : vector<8x32xf32>
    %125 = tpu.matmul %123, %124, %cst_44 {dimension_numbers = #tpu.dot_dimension_numbers<[1], [0], [0], [1], [0, 0, 1, 1], [], []>} : vector<8x64xbf16>, vector<64x32xbf16>, vector<8x32xf32> -> vector<8x32xf32>
    %c0_45 = arith.constant 0 : index
    %c0_46 = arith.constant 0 : index
    %126 = vector.load %arg11[%c0_45, %c0_46] : memref<1x32xf32, #tpu.memory_space<vmem>>, vector<1x32xf32>
    %127 = vector.broadcast %126 : vector<1x32xf32> to vector<8x32xf32>
    %128 = arith.addf %125, %127 : vector<8x32xf32>
    %c0_47 = arith.constant 0 : index
    %c0_48 = arith.constant 0 : index
    %c0_49 = arith.constant 0 : index
    %129 = vector.load %arg15[%c0_47, %c0_48, %c0_49] : memref<1x8x32xf32, #tpu.memory_space<vmem>>, vector<1x8x32xf32>
    %130 = vector.shape_cast %129 : vector<1x8x32xf32> to vector<8x32xf32>
    %131 = vector.shape_cast %128 : vector<8x32xf32> to vector<1x8x32xf32>
    tpu.vector_store %arg15[%c0_47, %c0_48, %c0_49], %131 {strides = array<i32>} : memref<1x8x32xf32, #tpu.memory_space<vmem>>, vector<1x8x32xf32>,
    %132 = arith.addf %114, %128 : vector<8x32xf32>
    %c0_50 = arith.constant 0 : index
    %c0_51 = arith.constant 0 : index
    %133 = vector.load %arg12[%c0_50, %c0_51] : memref<1x32xf32, #tpu.memory_space<vmem>>, vector<1x32xf32>
    %c0_52 = arith.constant 0 : index
    %c0_53 = arith.constant 0 : index
    %134 = vector.load %arg13[%c0_52, %c0_53] : memref<1x32xf32, #tpu.memory_space<vmem>>, vector<1x32xf32>
    %cst_54 = arith.constant dense<0.000000e+00> : vector<8xf32>
    %135 = vector.multi_reduction <add>, %132, %cst_54 [1] : vector<8x32xf32> to vector<8xf32>
    %136 = vector.shape_cast %135 : vector<8xf32> to vector<8x1xf32>
    %cst_55 = arith.constant 3.200000e+01 : f32
    %137 = vector.broadcast %cst_55 : f32 to vector<8x1xf32>
    %138 = arith.divf %136, %137 : vector<8x1xf32>
    %139 = vector.broadcast %138 : vector<8x1xf32> to vector<8x32xf32>
    %140 = arith.subf %132, %139 : vector<8x32xf32>
    %141 = arith.mulf %140, %140 : vector<8x32xf32>
    %cst_56 = arith.constant dense<0.000000e+00> : vector<8xf32>
    %142 = vector.multi_reduction <add>, %141, %cst_56 [1] : vector<8x32xf32> to vector<8xf32>
    %143 = vector.shape_cast %142 : vector<8xf32> to vector<8x1xf32>
    %cst_57 = arith.constant 3.200000e+01 : f32
    %144 = vector.broadcast %cst_57 : f32 to vector<8x1xf32>
    %145 = arith.divf %143, %144 : vector<8x1xf32>
    %cst_58 = arith.constant 9.99999974E-6 : f32
    %146 = vector.broadcast %cst_58 : f32 to vector<8x1xf32>
    %147 = arith.addf %145, %146 : vector<8x1xf32>
    %148 = math.rsqrt %147 : vector<8x1xf32>
    %149 = vector.broadcast %148 : vector<8x1xf32> to vector<8x32xf32>
    %150 = arith.mulf %140, %149 : vector<8x32xf32>
    %151 = vector.broadcast %133 : vector<1x32xf32> to vector<8x32xf32>
    %152 = arith.mulf %150, %151 : vector<8x32xf32>
    %153 = vector.broadcast %134 : vector<1x32xf32> to vector<8x32xf32>
    %154 = arith.addf %152, %153 : vector<8x32xf32>
    %c0_59 = arith.constant 0 : index
    %c0_60 = arith.constant 0 : index
    %c0_61 = arith.constant 0 : index
    %155 = vector.load %arg14[%c0_59, %c0_60, %c0_61] : memref<1x8x32xf32, #tpu.memory_space<vmem>>, vector<1x8x32xf32>
    %156 = vector.shape_cast %155 : vector<1x8x32xf32> to vector<8x32xf32>
    %157 = vector.shape_cast %154 : vector<8x32xf32> to vector<1x8x32xf32>
    tpu.vector_store %arg14[%c0_59, %c0_60, %c0_61], %157 {strides = array<i32>} : memref<1x8x32xf32, #tpu.memory_space<vmem>>, vector<1x8x32xf32>,
    return
  }
  func.func @transform_0(%arg0: i32) -> (i32, i32, i32) {
    %c0_i32 = arith.constant 0 : i32
    %c0_i32_0 = arith.constant 0 : i32
    %c0_i32_1 = arith.constant 0 : i32
    return %arg0, %c0_i32, %c0_i32_0 : i32, i32, i32
  }
  func.func @transform_1(%arg0: i32) -> (i32, i32) {
    %c0_i32 = arith.constant 0 : i32
    %c0_i32_0 = arith.constant 0 : i32
    %c0_i32_1 = arith.constant 0 : i32
    return %c0_i32, %c0_i32_0 : i32, i32
  }
  func.func @transform_2(%arg0: i32) -> (i32, i32) {
    %c0_i32 = arith.constant 0 : i32
    %c0_i32_0 = arith.constant 0 : i32
    %c0_i32_1 = arith.constant 0 : i32
    return %c0_i32, %c0_i32_0 : i32, i32
  }
  func.func @transform_3(%arg0: i32) -> (i32, i32) {
    %c0_i32 = arith.constant 0 : i32
    %c0_i32_0 = arith.constant 0 : i32
    %c0_i32_1 = arith.constant 0 : i32
    return %c0_i32, %c0_i32_0 : i32, i32
  }
  func.func @transform_4(%arg0: i32) -> (i32, i32) {
    %c0_i32 = arith.constant 0 : i32
    %c0_i32_0 = arith.constant 0 : i32
    %c0_i32_1 = arith.constant 0 : i32
    return %c0_i32, %c0_i32_0 : i32, i32
  }
  func.func @transform_5(%arg0: i32) -> (i32, i32) {
    %c0_i32 = arith.constant 0 : i32
    %c0_i32_0 = arith.constant 0 : i32
    %c0_i32_1 = arith.constant 0 : i32
    return %c0_i32, %c0_i32_0 : i32, i32
  }
  func.func @transform_6(%arg0: i32) -> (i32, i32) {
    %c0_i32 = arith.constant 0 : i32
    %c0_i32_0 = arith.constant 0 : i32
    %c0_i32_1 = arith.constant 0 : i32
    return %c0_i32, %c0_i32_0 : i32, i32
  }
  func.func @transform_7(%arg0: i32) -> (i32, i32) {
    %c0_i32 = arith.constant 0 : i32
    %c0_i32_0 = arith.constant 0 : i32
    %c0_i32_1 = arith.constant 0 : i32
    return %c0_i32, %c0_i32_0 : i32, i32
  }
  func.func @transform_8(%arg0: i32) -> (i32, i32) {
    %c0_i32 = arith.constant 0 : i32
    %c0_i32_0 = arith.constant 0 : i32
    %c0_i32_1 = arith.constant 0 : i32
    return %c0_i32, %c0_i32_0 : i32, i32
  }
  func.func @transform_9(%arg0: i32) -> (i32, i32) {
    %c0_i32 = arith.constant 0 : i32
    %c0_i32_0 = arith.constant 0 : i32
    %c0_i32_1 = arith.constant 0 : i32
    return %c0_i32, %c0_i32_0 : i32, i32
  }
  func.func @transform_10(%arg0: i32) -> (i32, i32) {
    %c0_i32 = arith.constant 0 : i32
    %c0_i32_0 = arith.constant 0 : i32
    %c0_i32_1 = arith.constant 0 : i32
    return %c0_i32, %c0_i32_0 : i32, i32
  }
  func.func @transform_11(%arg0: i32) -> (i32, i32) {
    %c0_i32 = arith.constant 0 : i32
    %c0_i32_0 = arith.constant 0 : i32
    %c0_i32_1 = arith.constant 0 : i32
    return %c0_i32, %c0_i32_0 : i32, i32
  }
  func.func @transform_12(%arg0: i32) -> (i32, i32) {
    %c0_i32 = arith.constant 0 : i32
    %c0_i32_0 = arith.constant 0 : i32
    %c0_i32_1 = arith.constant 0 : i32
    return %c0_i32, %c0_i32_0 : i32, i32
  }
  func.func @transform_13(%arg0: i32) -> (i32, i32, i32) {
    %c0_i32 = arith.constant 0 : i32
    %c0_i32_0 = arith.constant 0 : i32
    %c0_i32_1 = arith.constant 0 : i32
    return %arg0, %c0_i32, %c0_i32_0 : i32, i32, i32
  }
  func.func @transform_14(%arg0: i32) -> (i32, i32, i32) {
    %c0_i32 = arith.constant 0 : i32
    %c0_i32_0 = arith.constant 0 : i32
    %c0_i32_1 = arith.constant 0 : i32
    return %arg0, %c0_i32, %c0_i32_0 : i32, i32, i32
  }
}

</mosaic_0001>

<bundles_post_ra>
// kernel: transformer_encoder_layer.1
= control target key start
LH: loop header
LB: loop body
LE: loop exit
PB: predicated region body
PF: predicated region fallthrough
CT: control target
= control target key end

     0   :  { %s1679_s29 = smov 0   ;;  %s1853_s0 = inlined_call_operand.vmem [shape: f32[2,8,32], index: 0, kind: input, shape index: {}]   ;;  %s1854_s1 = inlined_call_operand.vmem [shape: bf16[32,96], index: 1, kind: input, shape index: {}]   ;;  %s1855_s2 = inlined_call_operand.vmem [shape: f32[1,96], index: 2, kind: input, shape index: {}]   ;;  %s1856_s3 = inlined_call_operand.vmem [shape: bf16[32,32], index: 3, kind: input, shape index: {}]   ;;  %s1857_s4 = inlined_call_operand.vmem [shape: f32[1,32], index: 4, kind: input, shape index: {}]   ;;  %s1858_s5 = inlined_call_operand.vmem [shape: f32[1,32], index: 5, kind: input, shape index: {}]   ;;  %s1859_s6 = inlined_call_operand.vmem [shape: f32[1,32], index: 6, kind: input, shape index: {}]   ;;  %s1860_s7 = inlined_call_operand.vmem [shape: bf16[32,64], index: 7, kind: input, shape index: {}]   ;;  %s1861_s8 = inlined_call_operand.vmem [shape: f32[1,64], index: 8, kind: input, shape index: {}]   ;;  %s1862_s9 = inlined_call_operand.vmem [shape: bf16[64,32], index: 9, kind: input, shape index: {}]   ;;  %s1863_s10 = inlined_call_operand.vmem [shape: f32[1,32], index: 10, kind: input, shape index: {}]   ;;  %s1864_s11 = inlined_call_operand.vmem [shape: f32[1,32], index: 11, kind: input, shape index: {}]   ;;  %s1865_s12 = inlined_call_operand.vmem [shape: f32[1,32], index: 12, kind: input, shape index: {}]   ;;  %s1866_s13 = inlined_call_operand.vmem [shape: f32[2,8,32], index: 13, kind: output, shape index: {0}]   ;;  %s1867_s14 = inlined_call_operand.vmem [shape: f32[2,8,32], index: 14, kind: output, shape index: {1}]  }
   0x1 LB: > { %s1372_s30 = sadd.s32 4294967295, %s1586_s29   ;;  %p1376_p0 = scmp.ge.s32.totalorder %s1586_s29, 1  ;;  %s1586_s29 = sphi %s1679_s29, %s25_s29  }
   0x2   : > { %p414_p1 = scmp.lt.s32.totalorder %s1586_s29, 3 }
   0x4   : > { %p415_p2 = pnand %p1376_p0, %p414_p1 }
   0x5   : > { %v1550_v0 = vld [vmem:[%s1854_s1] sm:$0xff] (!%p415_p2)   ;;  %v1588_v1 = vmov (!%p415_p2), 0.0   ;;  %v1551_v2 = vld [vmem:[%s1854_s1 + $0x8] sm:$0xff] (!%p415_p2)   ;;  %vm1589_vm0 = vmmov (!%p415_p2), 0   ;;  %p462_p3 = scmp.lt.s32.totalorder (!%p415_p2), %s1372_s30, 1  ;;  %vm500_vm1 = vcmask (!%p415_p2), 261120  }
   0x6   : > { %418 = sbr.rel (%p415_p2) target bundleno = 2394 (0x95a), region = 72  ;;  %1442 = vmatprep.subr.bf16.mxu0 (!%p415_p2), %v1588_v1  ;;  %1450 = vmatprep.subr.bf16.mxu1 (!%p415_p2), %v1588_v1  ;;  %v1380_v5 = vld [vmem:[%s1855_s2] ss:$0 sm:$0xff] (!%p415_p2)  ;;  %s1590_s25 = smov (!%p415_p2), 120   ;;  %vm548_vm2 = vcmask (!%p415_p2), 64512   ;;  %vm610_vm3 = vcmask (!%p415_p2), 1043456  }
   0x7   : > { %1443 = vmatpush3.bf16.msra.mxu0 (!%p415_p2), %v1550_v0  ;;  %1446 = vmatprep.mubr.msk.bf16.mxu0 (!%p415_p2), %vm1589_vm0, %v1588_v1  ;;  %s1591_s26 = smov (!%p415_p2), 96   ;;  %s1592_s27 = smov (!%p415_p2), 80   ;;  %vm1002_vm4 = vcmask (!%p415_p2), 130048   ;;  %vm1005_vm5 = vcmask (!%p415_p2), 195584   ;;  %vm1212_vm6 = vcmask (!%p415_p2), 523264  }
   0x8   : > { %1444 = vmatprep.subr.bf16.mxu0 (!%p415_p2), %v1588_v1  ;;  %1452 = vmatprep.mubr.msk.bf16.mxu1 (!%p415_p2), %vm1589_vm0, %v1588_v1  ;;  %s1593_s28 = smov (!%p415_p2), 88   ;;  %s1595_s15 = smov (!%p415_p2), 112  }
   0x9   : > { %s1596_s16 = smov (!%p415_p2), 104   ;;  %s1597_s17 = smov (!%p415_p2), 56  }
   0xa   : > { %s1598_s18 = smov (!%p415_p2), 64   ;;  %s1599_s20 = smov (!%p415_p2), 40  }
   0xb   : > { %1445 = vmatpush3.bf16.msra.mxu0 (!%p415_p2), %v1551_v2  ;;  %s1600_s21 = smov (!%p415_p2), 48  }
   0xc   : > { %1456 = vmatprep.subr.bf16.mxu0 (!%p415_p2), %v1588_v1 }
   0xd   : > { %s1869_s30 = smov (!%p462_p3, %s1372_s30), 1 }
   0xe   : > { %s1700_s19 = sshll.u32 %s1869_s30, 3  ;;  %s1594_s30 = smov 72  }
   0xf   : > { %s465_s22 = scalar_lea.vmem %s1853_s0, %s1700_s19 }
  0x10   : > { %v1707_v3 = vld [vmem:[%s465_s22] sm:$0xff]  ;;  %s1601_s22 = smov 8  }
  0x11   : > { %v476_v4 = vpack.c.bf16 %v1707_v3, %v1707_v3 }
  0x13   : > { %1447 = vmatmul.mubr.msk.bf16.vlgmr.msra.gmra.mrb[0].mxu0 %vm500_vm1, %v476_v4 }
  0x14   : > { %1458 = vmatprep.mubr.msk.bf16.mxu0 %vm1589_vm0, %v1588_v1 }
  0xe6   : > { %v538_v6 = vpop.f32.mrb[0].mxu0 }
  0xe7   : > { %v539_v7 = vadd.f32 %v1380_v5, %v538_v6  ;;  %v1448_v8 = vpop.f32.mrb[1].mxu0 }
  0xe8   : > { %v541_v9 = vpop.f32.mrb[2].mxu0 }
  0xe9   : > { %v1717_v10 = vpack.c.bf16 %v539_v7, %v539_v7  ;;  %v1449_v11 = vpop.f32.mrb[3].mxu0 }
  0xeb   : > { %657 = vrot.lane.b32.xlu1 %v1717_v10, %s1590_s25  ;;  %546 = vrot.lane.b32.xlu0 %v1717_v10, %s1591_s26  ;;  %s473_s25 = scalar_lea.vmem %s1867_s14, %s1700_s19 }
  0xef   : > { %770 = vrot.lane.b32.xlu1 %v1717_v10, %s1592_s27  ;;  %659 = vrot.lane.b32.xlu0 %v1717_v10, %s1593_s28  ;;  %s1602_s27 = smov 16   ;;  %s1603_s28 = smov 24  }
  0xf3   : > { %881 = vrot.lane.b32.xlu1 %v1717_v10, %s1594_s30  ;;  %768 = vrot.lane.b32.xlu0 %v1717_v10, %s1595_s15 }
  0xf7   : > { %879 = vrot.lane.b32.xlu0 %v1717_v10, %s1596_s16 }
 0x15d   : > { %v547_v12 = vpop.permute.xlu0 %546  ;;  %v658_v15 = vpop.permute.xlu1 %657 }
 0x15e   : > { %v553_v13 = vsel %vm548_vm2, %v547_v12, 0 }
 0x15f   : > { %1451 = vmatpush3.bf16.xpose.msra.mxu1 %v553_v13 }
 0x160   : > { %1462 = vmatprep.subr.bf16.mxu1 %v1588_v1 }
 0x161   : > { %v660_v14 = vpop.permute.xlu0 %659  ;;  %v771_v17 = vpop.permute.xlu1 %770 }
 0x162   : > { %v665_v16 = vsel %vm548_vm2, %v660_v14, 0  ;;  %v776_v18 = vsel %vm548_vm2, %v771_v17, 0 }
 0x165   : > { %v882_v19 = vpop.permute.xlu1 %881  ;;  %v769_v20 = vpop.permute.xlu0 %768 }
 0x166   : > { %1453 = vmatmul.mubr.msk.bf16.vlgmr.msra.gmra.mrb[0].mxu1 %vm548_vm2, %v1717_v10  ;;  %v887_v21 = vsel %vm548_vm2, %v882_v19, 0 }
 0x167   : > { %1463 = vmatpush3.bf16.xpose.msra.mxu1 %v665_v16  ;;  %1464 = vmatprep.mubr.msk.bf16.mxu1 %vm1589_vm0, %v1588_v1 }
 0x168   : > { %1474 = vmatprep.subr.bf16.mxu1 %v1588_v1 }
 0x169   : > { %v880_v22 = vpop.permute.xlu0 %879 }
 0x16e   : > { %1465 = vmatmul.mubr.msk.bf16.vlgmr.msra.gmra.mrb[4].mxu1 %vm548_vm2, %v658_v15 }
 0x16f   : > { %1475 = vmatpush3.bf16.xpose.msra.mxu1 %v776_v18  ;;  %1476 = vmatprep.mubr.msk.bf16.mxu1 %vm1589_vm0, %v1588_v1 }
 0x170   : > { %1486 = vmatprep.subr.bf16.mxu1 %v1588_v1 }
 0x176   : > { %1477 = vmatmul.mubr.msk.bf16.vlgmr.msra.gmra.mrb[8].mxu1 %vm548_vm2, %v769_v20 }
 0x177   : > { %1487 = vmatpush3.bf16.xpose.msra.mxu1 %v887_v21  ;;  %1488 = vmatprep.mubr.msk.bf16.mxu1 %vm1589_vm0, %v1588_v1 }
 0x178   : > { %1498 = vmatprep.subr.bf16.mxu1 %v1588_v1 }
 0x17e   : > { %1489 = vmatmul.mubr.msk.bf16.vlgmr.msra.gmra.mrb[12].mxu1 %vm548_vm2, %v880_v22 }
 0x17f   : > { %1502 = vmatprep.mubr.msk.bf16.mxu1 %vm1589_vm0, %v1588_v1 }
 0x239   : > { %v589_v23 = vpop.f32.mrb[0].mxu1 }
 0x23a   : > { %v1454_v24 = vpop.f32.mrb[1].mxu1  ;;  %v595_v25 = vsel %vm548_vm2, %v589_v23, -inf }
 0x23b   : > { %596 = vmax.xlane.f32.xlu1 %v595_v25  ;;  %v592_v26 = vpop.f32.mrb[2].mxu1 }
 0x23c   : > { %v1455_v27 = vpop.f32.mrb[3].mxu1  ;;  %v1552_v26 = vld [vmem:[%s1856_s3] sm:$0xff]  }
 0x23d   : > { %1499 = vmatpush3.bf16.msra.mxu1 %v1552_v26  ;;  %v1553_v27 = vld [vmem:[%s1856_s3 + $0x8] sm:$0xff]  }
 0x23e   : > { %1500 = vmatprep.subr.bf16.mxu1 %v1588_v1 }
 0x241   : > { %v701_v28 = vpop.f32.mrb[4].mxu1  ;;  %1501 = vmatpush3.bf16.msra.mxu1 %v1553_v27 }
 0x242   : > { %v1466_v29 = vpop.f32.mrb[5].mxu1  ;;  %v707_v30 = vsel %vm548_vm2, %v701_v28, -inf  ;;  %1514 = vmatprep.subr.bf16.mxu1 %v1588_v1 }
 0x243   : > { %708 = vmax.xlane.f32.xlu0 %v707_v30  ;;  %v704_v31 = vpop.f32.mrb[6].mxu1 }
 0x244   : > { %v1467_v32 = vpop.f32.mrb[7].mxu1 }
 0x249   : > { %v812_v33 = vpop.f32.mrb[8].mxu1 }
 0x24a   : > { %v1478_v34 = vpop.f32.mrb[9].mxu1  ;;  %v818_v35 = vsel %vm548_vm2, %v812_v33, -inf }
 0x24b   : > { %819 = vmax.xlane.f32.xlu0 %v818_v35  ;;  %v815_v36 = vpop.f32.mrb[10].mxu1 }
 0x24c   : > { %717 = vrot.lane.b32.xlu1 %v1717_v10, %s1597_s17  ;;  %v1479_v37 = vpop.f32.mrb[11].mxu1  ;;  %s469_s17 = scalar_lea.vmem %s1866_s13, %s1700_s19 }
 0x251   : > { %v923_v38 = vpop.f32.mrb[12].mxu1 }
 0x252   : > { %v1490_v39 = vpop.f32.mrb[13].mxu1  ;;  %v929_v42 = vsel %vm548_vm2, %v923_v38, -inf }
 0x253   : > { %v926_v40 = vpop.f32.mrb[14].mxu1 }
 0x254   : > { %v1491_v41 = vpop.f32.mrb[15].mxu1 }
 0x261   : > { %605 = vrot.lane.b32.xlu0 %v1717_v10, %s1598_s18 }
 0x265   : > { %939 = vrot.lane.b32.xlu0 %v1717_v10, %s1599_s20 }
 0x270   : > { %930 = vmax.xlane.f32.xlu1 %v929_v42 }
 0x281   : > { %828 = vrot.lane.b32.xlu1 %v1717_v10, %s1600_s21 }
 0x2c8   : > { %v597_v43 = vpop.xlane.xlu1 %596 }
 0x2c9   : > { %v598_v44 = vsub.f32 %v589_v23, %v597_v43 }
 0x2cb   : > { %v599_v45 = vmul.f32 1.442695, %v598_v44 }
 0x2cc   : > { %v718_v55 = vpop.permute.xlu1 %717 }
 0x2cd   : > { %1560 = vpow2.f32 %v599_v45  ;;  %v723_v59 = vsel %vm610_vm3, %v718_v55, 0 }
 0x2d0   : > { %v709_v46 = vpop.xlane.xlu0 %708 }
 0x2d1   : > { %v710_v47 = vsub.f32 %v701_v28, %v709_v46 }
 0x2d3   : > { %v711_v48 = vmul.f32 1.442695, %v710_v47 }
 0x2d5   : > { %1562 = vpow2.f32 %v711_v48 }
 0x2d7   : > { %v1561_v52 = vpop.eup %1560 }
 0x2d8   : > { %v820_v49 = vpop.xlane.xlu0 %819  ;;  %v604_v57 = vpack.c.bf16 %v1561_v52, %v1561_v52  ;;  %v601_v60 = vsel %vm548_vm2, %v1561_v52, 0.0 }
 0x2d9   : > { %v821_v50 = vsub.f32 %v812_v33, %v820_v49 }
 0x2db   : > { %v822_v51 = vmul.f32 1.442695, %v821_v50 }
 0x2dc   : > { %v606_v53 = vpop.permute.xlu0 %605 }
 0x2dd   : > { %1564 = vpow2.f32 %v822_v51  ;;  %v612_v54 = vsel %vm610_vm3, %v606_v53, 0  ;;  %v1392_v53 = vld [vmem:[%s1857_s4] ss:$0 sm:$0xff] }
 0x2de   : > { %1457 = vmatpush3.bf16.msra.mxu0 %v612_v54 }
 0x2df   : > { %v1563_v56 = vpop.eup %1562  ;;  %1468 = vmatprep.subr.bf16.mxu0 %v1588_v1 }
 0x2e0   : > { %v713_v58 = vsel %vm548_vm2, %v1563_v56, 0.0  ;;  %v716_v62 = vpack.c.bf16 %v1563_v56, %v1563_v56  ;;  %v940_v7 = vpop.permute.xlu0 %939 }
 0x2e1   : > { %714 = vadd.xlane.f32.xlu1 %v713_v58  ;;  %1459 = vmatmul.mubr.msk.bf16.vlgmr.msra.gmra.mrb[4].mxu0 %vm548_vm2, %v604_v57  ;;  %v945_v9 = vsel %vm610_vm3, %v940_v7, 0 }
 0x2e2   : > { %1469 = vmatpush3.bf16.msra.mxu0 %v723_v59  ;;  %1470 = vmatprep.mubr.msk.bf16.mxu0 %vm1589_vm0, %v1588_v1 }
 0x2e3   : > { %1480 = vmatprep.subr.bf16.mxu0 %v1588_v1 }
 0x2e5   : > { %602 = vadd.xlane.f32.xlu1 %v601_v60 }
 0x2e7   : > { %v1565_v61 = vpop.eup %1564 }
 0x2e8   : > { %v824_v63 = vsel %vm548_vm2, %v1565_v61, 0.0  ;;  %v827_v8 = vpack.c.bf16 %v1565_v61, %v1565_v61 }
 0x2e9   : > { %825 = vadd.xlane.f32.xlu0 %v824_v63  ;;  %1471 = vmatmul.mubr.msk.bf16.vlgmr.msra.gmra.mrb[8].mxu0 %vm548_vm2, %v716_v62 }
 0x2ea   : > { %1482 = vmatprep.mubr.msk.bf16.mxu0 %vm1589_vm0, %v1588_v1 }
 0x2fd   : > { %v931_v0 = vpop.xlane.xlu1 %930 }
 0x2fe   : > { %v932_v2 = vsub.f32 %v923_v38, %v931_v0 }
 0x300   : > { %v933_v4 = vmul.f32 1.442695, %v932_v2 }
 0x301   : > { %v829_v5 = vpop.permute.xlu1 %828 }
 0x302   : > { %1566 = vpow2.f32 %v933_v4  ;;  %v834_v6 = vsel %vm610_vm3, %v829_v5, 0  ;;  %v1554_v4 = vld [vmem:[%s1860_s7] sm:$0xff]  }
 0x303   : > { %1481 = vmatpush3.bf16.msra.mxu0 %v834_v6  ;;  %v1556_v5 = vld [vmem:[%s1862_s9] sm:$0xff]   ;;  %v1557_v6 = vld [vmem:[%s1862_s9 + $0x8] sm:$0xff]  }
 0x304   : > { %1492 = vmatprep.subr.bf16.mxu0 %v1588_v1 }
 0x306   : > { %1483 = vmatmul.mubr.msk.bf16.vlgmr.msra.gmra.mrb[12].mxu0 %vm548_vm2, %v827_v8 }
 0x307   : > { %1493 = vmatpush3.bf16.msra.mxu0 %v945_v9  ;;  %1494 = vmatprep.mubr.msk.bf16.mxu0 %vm1589_vm0, %v1588_v1 }
 0x308   : > { %1506 = vmatprep.subr.bf16.mxu0 %v1588_v1 }
 0x30c   : > { %v1567_v10 = vpop.eup %1566 }
 0x30d   : > { %v935_v11 = vsel %vm548_vm2, %v1567_v10, 0.0  ;;  %v938_v12 = vpack.c.bf16 %v1567_v10, %v1567_v10 }
 0x30e   : > { %936 = vadd.xlane.f32.xlu0 %v935_v11  ;;  %v1396_v11 = vld [vmem:[%s1858_s5] ss:$0 sm:$0xff] }
 0x30f   : > { %1495 = vmatmul.mubr.msk.bf16.vlgmr.msra.gmra.mrb[16].mxu0 %vm548_vm2, %v938_v12 }
 0x310   : > { %1510 = vmatprep.mubr.msk.bf16.mxu0 %vm1589_vm0, %v1588_v1  ;;  %1507 = vmatpush3.bf16.msra.mxu0 %v1554_v4 }
 0x311   : > { %1508 = vmatprep.subr.bf16.mxu0 %v1588_v1 }
 0x36e   : > { %v715_v13 = vpop.xlane.xlu1 %714 }
 0x36f   : > { %1568 = vrcp.f32 %v715_v13  ;;  %v1397_v13 = vld [vmem:[%s1859_s6] ss:$0 sm:$0xff] }
 0x372   : > { %v603_v43 = vpop.xlane.xlu1 %602 }
 0x376   : > { %v826_v25 = vpop.xlane.xlu0 %825 }
 0x377   : > { %1570 = vrcp.f32 %v826_v25 }
 0x379   : > { %v1569_v18 = vpop.eup %1568 }
 0x381   : > { %v1571_v29 = vpop.eup %1570 }
 0x39b   : > { %v937_v28 = vpop.xlane.xlu0 %936 }
 0x39c   : > { %1572 = vrcp.f32 %v937_v28 }
 0x39d   : > { %1574 = vrcp.f32 %v603_v43  ;;  %v1408_v43 = vld [vmem:[%s1864_s11] ss:$0 sm:$0xff] }
 0x3a6   : > { %v1573_v36 = vpop.eup %1572 }
 0x3a7   : > { %v1575_v44 = vpop.eup %1574 }
 0x3b4   : > { %v648_v14 = vpop.f32.mrb[4].mxu0 }
 0x3b5   : > { %v1460_v15 = vpop.f32.mrb[5].mxu0  ;;  %v655_v45 = vmul.f32 %v1575_v44, %v648_v14 }
 0x3b6   : > { %v651_v16 = vpop.f32.mrb[6].mxu0 }
 0x3b7   : > { %v1461_v17 = vpop.f32.mrb[7].mxu0  ;;  %v656_v48 = vpack.c.bf16 %v655_v45, %v655_v45  ;;  %v1409_v45 = vld [vmem:[%s1865_s12] ss:$0 sm:$0xff] }
 0x3b8   : > { %v1558_v17 = vld [vmem:[%s1862_s9 + $0x10] sm:$0xff]  }
 0x3bc   : > { %v759_v19 = vpop.f32.mrb[8].mxu0 }
 0x3bd   : > { %v766_v20 = vmul.f32 %v1569_v18, %v759_v19  ;;  %v1472_v21 = vpop.f32.mrb[9].mxu0  ;;  %v1559_v18 = vld [vmem:[%s1862_s9 + $0x18] sm:$0xff]   ;;  %v1398_v19 = vld [vmem:[%s1861_s8] ss:$0 sm:$0xff] }
 0x3be   : > { %v762_v22 = vpop.f32.mrb[10].mxu0 }
 0x3bf   : > { %v767_v23 = vpack.c.bf16 %v766_v20, %v766_v20  ;;  %v1473_v24 = vpop.f32.mrb[11].mxu0 }
 0x3c1   : > { %991 = vrot.lane.b32.xlu0 %v767_v23, %s1601_s22 }
 0x3d9   : > { %v870_v30 = vpop.f32.mrb[12].mxu0 }
 0x3da   : > { %v877_v31 = vmul.f32 %v1571_v29, %v870_v30  ;;  %v1484_v32 = vpop.f32.mrb[13].mxu0 }
 0x3db   : > { %v873_v33 = vpop.f32.mrb[14].mxu0 }
 0x3dc   : > { %v878_v34 = vpack.c.bf16 %v877_v31, %v877_v31  ;;  %v1485_v35 = vpop.f32.mrb[15].mxu0 }
 0x3de   : > { %994 = vrot.lane.b32.xlu1 %v878_v34, %s1602_s27 }
 0x3e2   : > { %v981_v37 = vpop.f32.mrb[16].mxu0 }
 0x3e3   : > { %v988_v38 = vmul.f32 %v1573_v36, %v981_v37  ;;  %v1496_v39 = vpop.f32.mrb[17].mxu0 }
 0x3e4   : > { %v984_v40 = vpop.f32.mrb[18].mxu0 }
 0x3e5   : > { %v989_v41 = vpack.c.bf16 %v988_v38, %v988_v38  ;;  %v1497_v42 = vpop.f32.mrb[19].mxu0 }
 0x3e7   : > { %997 = vrot.lane.b32.xlu1 %v989_v41, %s1603_s28 }
 0x433   : > { %v992_v46 = vpop.permute.xlu0 %991 }
 0x434   : > { %v1001_v49 = vsel %vm548_vm2, %v656_v48, %v992_v46 }
 0x450   : > { %v995_v47 = vpop.permute.xlu1 %994 }
 0x451   : > { %v1004_v50 = vsel %vm1002_vm4, %v1001_v49, %v995_v47 }
 0x459   : > { %v998_v51 = vpop.permute.xlu1 %997 }
 0x45a   : > { %v1007_v52 = vsel %vm1005_vm5, %v1004_v50, %v998_v51 }
 0x45b   : > { %1503 = vmatmul.mubr.msk.bf16.vlgmr.msra.gmra.mrb[16].mxu1 %vm500_vm1, %v1007_v52 }
 0x45c   : > { %1522 = vmatprep.mubr.msk.bf16.mxu1 %vm1589_vm0, %v1588_v1  ;;  %1515 = vmatpush3.bf16.msra.mxu1 %v1556_v5 }
 0x45d   : > { %1516 = vmatprep.subr.bf16.mxu1 %v1588_v1 }
 0x460   : > { %1517 = vmatpush3.bf16.msra.mxu1 %v1557_v6 }
 0x461   : > { %1518 = vmatprep.subr.bf16.mxu1 %v1588_v1 }
 0x464   : > { %1519 = vmatpush3.bf16.msra.mxu1 %v1558_v17 }
 0x465   : > { %1520 = vmatprep.subr.bf16.mxu1 %v1588_v1  ;;  %v1402_v1 = vld [vmem:[%s1863_s10] ss:$0 sm:$0xff] }
 0x468   : > { %1521 = vmatpush3.bf16.msra.mxu1 %v1559_v18 }
 0x52e   : > { %v1067_v54 = vpop.f32.mrb[16].mxu1 }
 0x52f   : > { %v1068_v55 = vadd.f32 %v1392_v53, %v1067_v54  ;;  %v1504_v56 = vpop.f32.mrb[17].mxu1 }
 0x530   : > { %v1070_v57 = vpop.f32.mrb[18].mxu1 }
 0x531   : > { %v1505_v58 = vpop.f32.mrb[19].mxu1  ;;  %v1073_v59 = vadd.f32 %v1068_v55, %v1707_v3  ;;  %v1555_v3 = vld [vmem:[%s1860_s7 + $0x8] sm:$0xff]  }
 0x532   : > { %1509 = vmatpush3.bf16.msra.mxu0 %v1555_v3 }
 0x533   : > { %v1076_v60 = vsel %vm500_vm1, %v1073_v59, 0.0 }
 0x534   : > { %1077 = vadd.xlane.f32.xlu0 %v1076_v60 }
 0x5c1   : > { %v1078_v61 = vpop.xlane.xlu0 %1077 }
 0x5c2   : > { %v1080_v62 = vmul.f32 0.03125, %v1078_v61 }
 0x5c4   : > { %v1081_v63 = vsub.f32 %v1073_v59, %v1080_v62 }
 0x5c6   : > { %v1082_v0 = vmul.f32 %v1081_v63, %v1081_v63 }
 0x5c8   : > { %v1083_v2 = vsel %vm500_vm1, %v1082_v0, 0.0 }
 0x5c9   : > { %1084 = vadd.xlane.f32.xlu1 %v1083_v2 }
 0x656   : > { %v1085_v7 = vpop.xlane.xlu1 %1084 }
 0x657   : > { %v1086_v8 = vmul.f32 0.03125, %v1085_v7 }
 0x659   : > { %v1087_v9 = vadd.f32 1e-05, %v1086_v8 }
 0x65b   : > { %1576 = vrsqrt.f32 %v1087_v9 }
 0x665   : > { %v1577_v10 = vpop.eup %1576 }
 0x666   : > { %v1089_v12 = vmul.f32 %v1577_v10, %v1081_v63 }
 0x668   : > { %v1096_v14 = vmul.f32 %v1396_v11, %v1089_v12 }
 0x66a   : > { %v1103_v15 = vadd.f32 %v1397_v13, %v1096_v14 }
 0x66c   : > { %v1104_v16 = vpack.c.bf16 %v1103_v15, %v1103_v15 }
 0x66e   : > { %1511 = vmatmul.mubr.msk.bf16.vlgmr.msra.gmra.mrb[20].mxu0 %vm500_vm1, %v1104_v16 }
 0x741   : > { %v1165_v20 = vpop.f32.mrb[20].mxu0 }
 0x742   : > { %v1166_v21 = vadd.f32 %v1398_v19, %v1165_v20  ;;  %v1512_v22 = vpop.f32.mrb[21].mxu0 }
 0x743   : > { %v1168_v23 = vpop.f32.mrb[22].mxu0 }
 0x744   : > { %v1171_v24 = vmax.f32 %v1166_v21, 0.0  ;;  %v1513_v25 = vpop.f32.mrb[23].mxu0 }
 0x746   : > { %v1172_v26 = vpack.c.bf16 %v1171_v24, %v1171_v24 }
 0x748   : > { %1523 = vmatmul.mubr.msk.bf16.vlgmr.msra.gmra.mrb[20].mxu1 %vm1212_vm6, %v1172_v26 }
 0x81b   : > { %v1250_v27 = vpop.f32.mrb[20].mxu1 }
 0x81c   : > { %v1251_v28 = vadd.f32 %v1402_v1, %v1250_v27  ;;  %v1524_v29 = vpop.f32.mrb[21].mxu1 }
 0x81d   : > { %v1253_v30 = vpop.f32.mrb[22].mxu1 }
 0x81e   : > { %1256 = vst.msk [vmem:[%s473_s25] sm:$0xff] %vm500_vm1, %v1251_v28  ;;  %v1525_v31 = vpop.f32.mrb[23].mxu1  ;;  %v1257_v32 = vadd.f32 %v1251_v28, %v1103_v15 }
 0x820   : > { %v1260_v33 = vsel %vm500_vm1, %v1257_v32, 0.0 }
 0x821   : > { %1261 = vadd.xlane.f32.xlu0 %v1260_v33 }
 0x8ae   : > { %v1262_v34 = vpop.xlane.xlu0 %1261 }
 0x8af   : > { %v1263_v35 = vmul.f32 0.03125, %v1262_v34 }
 0x8b1   : > { %v1264_v36 = vsub.f32 %v1257_v32, %v1263_v35 }
 0x8b3   : > { %v1265_v37 = vmul.f32 %v1264_v36, %v1264_v36 }
 0x8b5   : > { %v1266_v38 = vsel %vm500_vm1, %v1265_v37, 0.0 }
 0x8b6   : > { %1267 = vadd.xlane.f32.xlu0 %v1266_v38 }
 0x943   : > { %v1268_v39 = vpop.xlane.xlu0 %1267 }
 0x944   : > { %v1269_v40 = vmul.f32 0.03125, %v1268_v39 }
 0x946   : > { %v1270_v41 = vadd.f32 1e-05, %v1269_v40 }
 0x948   : > { %1578 = vrsqrt.f32 %v1270_v41 }
 0x952   : > { %v1579_v42 = vpop.eup %1578 }
 0x953   : > { %v1272_v44 = vmul.f32 %v1579_v42, %v1264_v36 }
 0x955   : > { %v1279_v46 = vmul.f32 %v1408_v43, %v1272_v44 }
 0x957   : > { %v1286_v47 = vadd.f32 %v1409_v45, %v1279_v46 }
 0x959   : > { %1287 = vst.msk [vmem:[%s469_s17] sm:$0xff] %vm500_vm1, %v1286_v47 }
 0x95a PF: > { %s25_s29 = sadd.s32 1, %s1586_s29  }
 0x95b   : > { %p22_p4 = scmp.ge.s32.totalorder %s25_s29, 4  }
 0x95d   :  { %24 = sbr.rel (!%p22_p4) target bundleno = 1 (0x1), region = 114 }

</bundles_post_ra>
